<compile_context>
chip_gen: v7x
topology: tpu7x:2x2x1
jax: 0.10.0
libtpu: 0.0.40
codegen_flags: <defaults>
</compile_context>

<pallas_src>
import functools

import jax
import jax.numpy as jnp
from jax.experimental import pallas as pl
from jax.experimental.pallas import tpu as pltpu


# ----------------------------------------------------------------------------
# Kernels
# ----------------------------------------------------------------------------
def _mean_readout_kernel(seq_ref, out_ref, acc_ref, *, inv_n):
    # seq_ref: (TB, TN, TD)   out_ref: (TB, TD)   acc_ref: (TB, TD) f32 scratch
    n = pl.program_id(2)

    @pl.when(n == 0)
    def _():
        acc_ref[...] = jnp.zeros_like(acc_ref)

    s = seq_ref[...]                                  # (TB, TN, TD)
    if s.dtype == jnp.float32:
        # Already f32: a plain reduce is exact and its VPU adds (~0.25 op per
        # loaded byte) stay hidden under the HBM DMA even on v7x.
        acc_ref[...] += jnp.sum(s, axis=1)
    else:
        # Sub-f32 (bf16, ...): sum on the MXU as a batched matvec with a
        # constant ones LHS.  f32 accumulation happens natively in the MXU,
        # so no 2x-size f32 temp and no per-step VALU cast / XLU collapse.
        tb, tn, _ = s.shape
        ones = jnp.ones((tb, 1, tn), dtype=s.dtype)
        acc_ref[...] += jnp.einsum(
            "bqt,btd->bqd", ones, s,
            preferred_element_type=jnp.float32)[:, 0, :]

    @pl.when(n == pl.num_programs(2) - 1)
    def _():
        # mean = sum * (1/N); 1/N (original N) folded into one scalar multiply.
        out_ref[...] = (acc_ref[...] * inv_n).astype(out_ref.dtype)


def _masked_readout_kernel(seq_ref, msk_ref, den_ref, out_ref, acc_ref):
    # seq_ref: (TB, TN, TD)   msk_ref: (TB, 1, TN) lane-dense
    # den_ref: (TB, 1) f32    out_ref: (TB, TD)    acc_ref: (TB, TD) f32
    n = pl.program_id(2)

    @pl.when(n == 0)
    def _():
        acc_ref[...] = jnp.zeros_like(acc_ref)

    s = seq_ref[...]                                   # (TB, TN, TD)
    m = msk_ref[...]                                   # (TB, 1, TN)

    # Masked sum as an MXU batched matvec (f32 accumulation on the MXU;
    # frees the VPU/XLU slots for the mem-bound stream).
    acc_ref[...] += jnp.einsum(
        "bqt,btd->bqd", m, s, preferred_element_type=jnp.float32)[:, 0, :]

    @pl.when(n == pl.num_programs(2) - 1)
    def _():
        # Denominator was hoisted to the wrapper.  Zero-sum masks give
        # inf/nan exactly like the PyTorch reference.
        out_ref[...] = (acc_ref[...] / den_ref[...]).astype(out_ref.dtype)


# ----------------------------------------------------------------------------
# Tile planning
# ----------------------------------------------------------------------------
def _round_down(x, m):
    return (x // m) * m


def _plan_tiles(B, N, D, elem_bytes, budget_bytes):
    """Returns (TB, TD, TN, N_pad).  TN/TD are multiples of 128 or full-extent."""
    # Output/denominator blocks need TB % 8 == 0 or TB == B (second-to-last dim).
    TB = 8 if B % 8 == 0 else B
    # TODO(synk): a very large B that is not a multiple of 8 would need batch
    # padding to keep the full-extent fallback from blowing the VMEM budget.

    # Feature tile: a multiple of 128 dividing D (lane-dense output stores and
    # enough room to keep TN >= 256), else the full extent.
    if D % 128 == 0:
        max_td = max(128, _round_down(budget_bytes // (TB * 256 * elem_bytes), 128))
        TD = min(D, max_td)
        while D % TD:
            TD -= 128
    else:
        TD = D

    # Reduction tile: a multiple of 128 (lane dim of the (TB,1,TN) mask block),
    # or the full extent when N is awkward but small enough.
    max_tn = max(128, _round_down(budget_bytes // (TB * TD * elem_bytes), 128))
    if N % 128 == 0:
        TN = min(N, max_tn)
        while N % TN:
            TN -= 128
        n_pad = N
    elif TB * TD * N * elem_bytes <= 3 * budget_bytes:
        TN, n_pad = N, N                    # full-extent N block (always legal)
    else:
        TN = max_tn                          # zero-pad N up to a multiple of TN
        n_pad = -(-N // TN) * TN
    return TB, TD, TN, n_pad


# ----------------------------------------------------------------------------
# Wrapper (Pallas equivalent of AvgReadout.forward)
# ----------------------------------------------------------------------------
def avg_readout(seq, msk=None, *, block_budget_bytes=4 * 1024 * 1024):
    B, N, D = seq.shape
    elem = jnp.dtype(seq.dtype).itemsize
    TB, TD, TN, N_pad = _plan_tiles(B, N, D, elem, block_budget_bytes)
    grid = (B // TB, D // TD, N_pad // TN)

    seq_spec = pl.BlockSpec((TB, TN, TD), lambda b, d, n: (b, n, d))
    out_spec = pl.BlockSpec((TB, TD), lambda b, d, n: (b, d))
    cparams = pltpu.CompilerParams(
        dimension_semantics=("parallel", "parallel", "arbitrary"),
        vmem_limit_bytes=48 * 1024 * 1024)
    scratch = [pltpu.VMEM((TB, TD), jnp.float32)]

    if N_pad != N:
        # Rare awkward-N case: zero-pad the reduction axis (zeros are inert in
        # both numerator and denominator).
        # TODO(synk): replace with an in-kernel tail mask to avoid the extra
        # HBM copy for huge ragged N.
        seq = jnp.pad(seq, ((0, 0), (0, N_pad - N), (0, 0)))
        if msk is not None:
            msk = jnp.pad(msk, ((0, 0), (0, N_pad - N)))

    if msk is None:
        kernel = functools.partial(_mean_readout_kernel, inv_n=1.0 / N)
        return pl.pallas_call(
            kernel,
            out_shape=jax.ShapeDtypeStruct((B, D), seq.dtype),
            grid=grid,
            in_specs=[seq_spec],
            out_specs=out_spec,
            scratch_shapes=scratch,
            compiler_params=cparams,
        )(seq)

    # Denominator hoisted to the wrapper: a tiny XLA f32 reduce over (B, N),
    # passed as a (B, 1) input -> no per-step mask cast / XLU lane reduce and
    # no denominator scratch inside the kernel.
    den = jnp.sum(msk.astype(jnp.float32), axis=1, keepdims=True)      # (B, 1)
    # Lane-dense mask (B, 1, N_pad) used as the MXU LHS.
    # TODO(synk): for bf16 activations the mask is rounded to bf16 here, a
    # tiny divergence from the f32-mask PyTorch reference.
    msk3 = msk.reshape(B, 1, N_pad).astype(seq.dtype)

    return pl.pallas_call(
        _masked_readout_kernel,
        out_shape=jax.ShapeDtypeStruct((B, D), seq.dtype),
        grid=grid,
        in_specs=[
            seq_spec,
            pl.BlockSpec((TB, 1, TN), lambda b, d, n: (b, 0, n)),
            pl.BlockSpec((TB, 1), lambda b, d, n: (b, 0)),
        ],
        out_specs=out_spec,
        scratch_shapes=scratch,
        compiler_params=cparams,
    )(seq, msk3, den)


# ----------------------------------------------------------------------------
# Self-test
# ----------------------------------------------------------------------------
def _reference(seq, msk):
    s = seq.astype(jnp.float32)
    if msk is None:
        return jnp.mean(s, axis=1)
    m = msk[:, :, None].astype(jnp.float32)
    return jnp.sum(s * m, axis=1) / jnp.sum(m, axis=1)


if __name__ == "__main__":
    key = jax.random.PRNGKey(0)

    # (B, N, D, dtype, block_budget_bytes or None for default).  Small shapes
    # that still exercise: full-extent blocks, TB=8 tiling, multi-step N
    # reduction, the parallel D split, zero-padded awkward N, and the bf16 MXU
    # ones-matvec path.
    cases = [
        (2, 8, 32, jnp.float32, None),
        (16, 48, 128, jnp.float32, None),
        (16, 512, 128, jnp.float32, 128 * 1024),
        (8, 128, 512, jnp.float32, 128 * 1024),
        (8, 200, 128, jnp.float32, 128 * 1024),
        (8, 256, 128, jnp.bfloat16, 128 * 1024),
    ]

    for (B, N, D, dtype, budget) in cases:
        key, k_seq, k_msk = jax.random.split(key, 3)
        seq = jax.random.normal(k_seq, (B, N, D), dtype=jnp.float32).astype(dtype)
        # Soft (float) mask, as the PyTorch module allows.
        msk = jax.random.uniform(k_msk, (B, N), dtype=jnp.float32) + 0.1

        kwargs = {} if budget is None else dict(block_budget_bytes=budget)
        out_mean = jax.block_until_ready(avg_readout(seq, None, **kwargs))
        out_masked = jax.block_until_ready(avg_readout(seq, msk, **kwargs))

        ref_mean = _reference(seq, None)
        ref_masked = _reference(seq, msk)

        assert out_mean.shape == (B, D) and out_masked.shape == (B, D)
        if dtype == jnp.float32:
            # Unmasked f32 path is an exact f32 reduce.
            assert jnp.allclose(out_mean, ref_mean, atol=1e-5, rtol=1e-5), (B, N, D)
            # Masked path runs on the MXU at default matmul precision.
            assert jnp.allclose(out_masked, ref_masked, atol=5e-3, rtol=5e-3), (B, N, D)
        else:
            om = out_mean.astype(jnp.float32)
            ok = out_masked.astype(jnp.float32)
            assert jnp.allclose(om, ref_mean, atol=2e-2, rtol=2e-2), (B, N, D)
            assert jnp.allclose(ok, ref_masked, atol=2e-2, rtol=2e-2), (B, N, D)

    print("KERNEL_OK")
</pallas_src>

<mosaic_0001>
module attributes {stable_mosaic.version = 11 : i64} {
  func.func @_mean_readout_kernel(%arg0: i32, %arg1: i32, %arg2: i32, %arg3: memref<2x8x32xf32, #tpu.memory_space<vmem>>, %arg4: memref<2x32xf32, #tpu.memory_space<vmem>>, %arg5: memref<2x32xf32, #tpu.memory_space<vmem>>) attributes {dimension_semantics = [#tpu.dimension_semantics<parallel>, #tpu.dimension_semantics<parallel>, #tpu.dimension_semantics<arbitrary>], iteration_bounds = array<i64: 1, 1, 1>, scalar_prefetch = 0 : i64, scratch_operands = 1 : i64, tpu.core_type = #tpu.core_type<tc>, window_params = [{transform_indices = @transform_0, window_bounds = array<i64: 2, 8, 32>}, {transform_indices = @transform_1, window_bounds = array<i64: 2, 32>}]} {
    %c0_i32 = arith.constant 0 : i32
    %0 = arith.cmpi eq, %arg2, %c0_i32 : i32
    %1 = arith.extui %0 : i1 to i32
    %c0_i32_0 = arith.constant 0 : i32
    %2 = arith.cmpi ne, %1, %c0_i32_0 : i32
    scf.if %2 {
      %cst_9 = arith.constant 0.000000e+00 : f32
      %11 = vector.broadcast %cst_9 : f32 to vector<2x32xf32>
      %c0_10 = arith.constant 0 : index
      %c0_11 = arith.constant 0 : index
      %12 = vector.load %arg5[%c0_10, %c0_11] : memref<2x32xf32, #tpu.memory_space<vmem>>, vector<2x32xf32>
      tpu.vector_store %arg5[%c0_10, %c0_11], %11 {strides = array<i32>} : memref<2x32xf32, #tpu.memory_space<vmem>>, vector<2x32xf32>,
    } else {
    }
    %c0 = arith.constant 0 : index
    %c0_1 = arith.constant 0 : index
    %c0_2 = arith.constant 0 : index
    %3 = vector.load %arg3[%c0, %c0_1, %c0_2] : memref<2x8x32xf32, #tpu.memory_space<vmem>>, vector<2x8x32xf32>
    %c0_3 = arith.constant 0 : index
    %c0_4 = arith.constant 0 : index
    %4 = vector.load %arg5[%c0_3, %c0_4] : memref<2x32xf32, #tpu.memory_space<vmem>>, vector<2x32xf32>
    %cst = arith.constant dense<0.000000e+00> : vector<2x32xf32>
    %5 = vector.multi_reduction <add>, %3, %cst [1] : vector<2x8x32xf32> to vector<2x32xf32>
    %6 = arith.addf %4, %5 : vector<2x32xf32>
    %c0_5 = arith.constant 0 : index
    %c0_6 = arith.constant 0 : index
    %7 = vector.load %arg5[%c0_5, %c0_6] : memref<2x32xf32, #tpu.memory_space<vmem>>, vector<2x32xf32>
    tpu.vector_store %arg5[%c0_5, %c0_6], %6 {strides = array<i32>} : memref<2x32xf32, #tpu.memory_space<vmem>>, vector<2x32xf32>,
    %c0_i32_7 = arith.constant 0 : i32
    %8 = arith.cmpi eq, %arg2, %c0_i32_7 : i32
    %9 = arith.extui %8 : i1 to i32
    %c0_i32_8 = arith.constant 0 : i32
    %10 = arith.cmpi ne, %9, %c0_i32_8 : i32
    scf.if %10 {
      %c0_9 = arith.constant 0 : index
      %c0_10 = arith.constant 0 : index
      %11 = vector.load %arg5[%c0_9, %c0_10] : memref<2x32xf32, #tpu.memory_space<vmem>>, vector<2x32xf32>
      %cst_11 = arith.constant 1.250000e-01 : f32
      %12 = vector.broadcast %cst_11 : f32 to vector<2x32xf32>
      %13 = arith.mulf %11, %12 : vector<2x32xf32>
      %c0_12 = arith.constant 0 : index
      %c0_13 = arith.constant 0 : index
      %14 = vector.load %arg4[%c0_12, %c0_13] : memref<2x32xf32, #tpu.memory_space<vmem>>, vector<2x32xf32>
      tpu.vector_store %arg4[%c0_12, %c0_13], %13 {strides = array<i32>} : memref<2x32xf32, #tpu.memory_space<vmem>>, vector<2x32xf32>,
    } else {
    }
    return
  }
  func.func @transform_0(%arg0: i32, %arg1: i32, %arg2: i32) -> (i32, i32, i32) {
    %c0_i32 = arith.constant 0 : i32
    return %arg0, %arg2, %arg1 : i32, i32, i32
  }
  func.func @transform_1(%arg0: i32, %arg1: i32, %arg2: i32) -> (i32, i32) {
    %c0_i32 = arith.constant 0 : i32
    return %arg0, %arg1 : i32, i32
  }
}

</mosaic_0001>

<bundles_post_ra>
// kernel: tpu_custom_call.1
= control target key start
LH: loop header
LB: loop body
LE: loop exit
PB: predicated region body
PF: predicated region fallthrough
CT: control target
= control target key end

     0   :  { %6 = vsyncpa [#allocation4], 0  ;;  %s171_s0 = inlined_call_operand.hbm [shape: f32[2,8,32], index: 0, kind: input, shape index: {}]   ;;  %s172_s1 = inlined_call_operand.hbm [shape: f32[2,32], index: 1, kind: output, shape index: {}]  }
   0x1   :  { %7 = vsyncpa [#allocation5], 0  ;;  %s129_s6 = smov [#allocation3]   ;;  %s81_s10 = scalar_lea.hbm %s171_s0, 256 }
   0x2   :  { %s13_s7 = sshll.u32 %s129_s6, 4  ;;  %p82_p0 = scmp.ne.s32.totalorder %s171_s0, %s81_s10  ;;  %s14_s7 = int_to_ptr.vmem [resolvable:$true] %s13_s7 }
   0x3   :  { %p85_p1 = scmp.lt.u32.totalorder %s81_s10, %s171_s0 }
   0x5   :  { %p87_p2 = pnand %p85_p1, %p82_p0 }
   0x7   :  { %90 = shalt.err (!%p87_p2)
}
   0x8   :  { %s91_s15 = scalar_lea.vmem %s14_s7, 256  ;;  %p96_p4 = scmp.lt.s32.totalorder %s14_s7, %s14_s7 }
   0x9   :  { %p92_p3 = scmp.ne.s32.totalorder %s14_s7, %s91_s15  ;;  %p97_p5 = scmp.lt.s32.totalorder %s91_s15, %s91_s15 }
   0xb   :  { %p98_p6 = por %p97_p5, %p96_p4 }
   0xd   :  { %p99_p7 = pnand %p98_p6, %p92_p3 }
   0xf   :  { %102 = shalt.err (!%p99_p7)
}
  0x10   :  { %s130_s16 = smov 128   ;;  %s131_s17 = smov 8  }
  0x11   :  { %19 = dma.hbm_to_vmem [thread:$0]  %s171_s0, 256, %s14_s7, [#allocation4], %s130_s16, %s130_s16, %s131_s17  }
  0x12   :  { %125 = dma.done.wait [#allocation4], 256  }
  0x13   :  { %126 = vsyncadd [#allocation4], 4294967040  ;;  %vm27_vm0 = vcmask 254976   ;;  %v132_v0 = vmov 0.0   ;;  %vm32_vm1 = vcmask 261120   ;;  %v29_v1 = vld [vmem:[#allocation3] sm:$0xff] }
  0x14   :  { %28 = vst.msk [vmem:[#allocation2] sm:$0x3] %vm27_vm0, %v132_v0  ;;  %v30_v2 = vld [vmem:[#allocation3 + $0x8] sm:$0xff]  ;;  %v33_v3 = vsel %vm32_vm1, %v29_v1, 0.0  ;;  %vm49_vm2 = vcmask 1041409   ;;  %s133_s0 = smov [#allocation6]  }
  0x15   :  { %v40_v4 = vsel %vm32_vm1, %v30_v2, 0.0  ;;  %v34_v5 = vrot.slane %v33_v3, 4  ;;  %s67_s20 = sshll.u32 %s133_s0, 4  ;;  %s68_s20 = int_to_ptr.vmem [resolvable:$true] %s67_s20 }
  0x16   :  { %v41_v6 = vrot.slane %v40_v4, 4  ;;  %s103_s21 = scalar_lea.vmem %s68_s20, 32  ;;  %p108_p9 = scmp.lt.s32.totalorder %s68_s20, %s68_s20 }
  0x17   :  { %v35_v7 = vadd.f32 %v34_v5, %v33_v3  ;;  %p104_p8 = scmp.ne.s32.totalorder %s68_s20, %s103_s21  ;;  %p109_p10 = scmp.lt.s32.totalorder %s103_s21, %s103_s21 }
  0x18   :  { %v42_v8 = vadd.f32 %v41_v6, %v40_v4 }
  0x19   :  { %v36_v9 = vrot.slane %v35_v7, 2  ;;  %p110_p11 = por %p109_p10, %p108_p9 }
  0x1a   :  { %v43_v10 = vrot.slane %v42_v8, 2 }
  0x1b   :  { %v37_v11 = vadd.f32 %v36_v9, %v35_v7  ;;  %v31_v15 = vld [vmem:[#allocation2] sm:$0x3]  ;;  %p111_p12 = pnand %p110_p11, %p104_p8 }
  0x1c   :  { %v44_v12 = vadd.f32 %v43_v10, %v42_v8 }
  0x1d   :  { %v38_v13 = vrot.slane %v37_v11, 1 }
  0x1e   :  { %v45_v14 = vrot.slane %v44_v12, 1 }
  0x1f   :  { %v39_v16 = vadd.f32 %v38_v13, %v37_v11 }
  0x20   :  { %v46_v17 = vadd.f32 %v45_v14, %v44_v12 }
  0x22   :  { %v50_v18 = vsel %vm49_vm2, %v46_v17, %v39_v16 }
  0x23   :  { %v52_v19 = vadd.f32 %v50_v18, %v31_v15 }
  0x25   :  { %54 = vst.msk [vmem:[#allocation2] sm:$0x3] %vm27_vm0, %v52_v19 }
  0x2c   :  { %v58_v20 = vld [vmem:[#allocation2] sm:$0x3] }
  0x2d   :  { %v59_v21 = vmul.f32 0.125, %v58_v20 }
  0x2f   :  { %60 = vst.msk [vmem:[#allocation6] sm:$0x3] %vm27_vm0, %v59_v21 }
  0x30   :  { %114 = shalt.err (!%p111_p12)
}
  0x31   :  { %s115_s24 = scalar_lea.hbm %s172_s1, 32 }
  0x32   :  { %p116_p13 = scmp.ne.s32.totalorder %s172_s1, %s115_s24  ;;  %p119_p0 = scmp.lt.u32.totalorder %s115_s24, %s172_s1 }
  0x34   :  { %p121_p1 = pnand %p119_p0, %p116_p13 }
  0x36   :  { %124 = shalt.err (!%p121_p1)
}
  0x37   :  { %70 = dma.vmem_to_hbm [thread:$0]  %s68_s20, 32, %s172_s1, [#allocation5]  }
  0x38   :  { %127 = dma.done.wait [#allocation5], 32  }
  0x39   :  { %128 = vsyncadd [#allocation5], 4294967264 }
  0x3a   :  { %74 = vsyncpa [#allocation4], 1 }
  0x3b   :  { %75 = vsyncpa [#allocation5], 1 }

</bundles_post_ra>
